<compile_context>
chip_gen: v7x
topology: tpu7x:2x2x1
jax: 0.10.0
libtpu: 0.0.40
codegen_flags: <defaults>
</compile_context>

<pallas_src>
import math
import functools

import jax
import jax.numpy as jnp
from jax.experimental import pallas as pl
from jax.experimental.pallas import tpu as pltpu


def _round_up(x, m):
    return ((x + m - 1) // m) * m


def _econv1d_kernel(*refs, K, use_bias):
    """refs = (x_cur, [x_halo], w_flat, [b], o).

    x_cur : (C_eff, TL)        current activation tile (batch dim squeezed)
    x_halo: (C_eff, 128)       next-128-columns halo (only when K > 1)
    w_flat: (TCO, K*C_eff)     pre-scaled weight, tap-major contraction layout
    b     : (TCO, 1)           bias (only when use_bias)
    o     : (TCO, TL)          output tile
    """
    idx = 0
    x_cur_ref = refs[idx]; idx += 1
    x_halo_ref = None
    if K > 1:
        x_halo_ref = refs[idx]; idx += 1
    w_ref = refs[idx]; idx += 1
    b_ref = None
    if use_bias:
        b_ref = refs[idx]; idx += 1
    o_ref = refs[idx]

    cur = x_cur_ref[...]                      # (C_eff, TL)
    if K > 1:
        hal = x_halo_ref[...]                 # (C_eff, 128)
        # Build the stacked operand directly from cur+halo (no full-window
        # materialization); each tap's shift is paid exactly once here.
        pieces = [cur]
        for j in range(1, K):
            pieces.append(jnp.concatenate([cur[:, j:], hal[:, :j]], axis=-1))
        x_stack = jnp.concatenate(pieces, axis=0)   # (K*C_eff, TL)
    else:
        x_stack = cur

    # One MXU matmul with contraction K*C_eff (fills the 128/256-wide MXU).
    acc = jnp.dot(w_ref[...], x_stack, preferred_element_type=jnp.float32)
    if use_bias:
        acc = acc + b_ref[...]                # f32 bias add (v5e-safe)
    o_ref[...] = acc.astype(o_ref.dtype)


def _tpu_vmem_capacity():
    try:
        cap = int(pltpu.get_tpu_info().vmem_capacity_bytes)
        if cap > 0:
            return cap
    except Exception:
        pass
    return None


def equalized_conv1d(x, weight, bias=None, *, stride=1, padding=0,
                     use_bias=True, compute_dtype=None):
    """Equalized-LR conv1d.  x: (N, C_in, L), weight: (C_out, C_in, K)."""
    N, C_in, L = x.shape
    C_out, _, K = weight.shape
    s = int(stride)
    scale = math.sqrt(2.0) / math.sqrt(C_in * K)
    out_dtype = x.dtype

    L_pad = L + 2 * padding
    L_out = (L_pad - K) // s + 1
    assert L_out > 0, "output length must be positive"

    # Polyphase decomposition: a stride-s conv is a stride-1 conv over the
    # phase-stacked input (C_in*s channels) with J = ceil(K/s) taps.
    J = -(-K // s)
    assert J <= 128, "kernel too long for the 128-wide halo"

    cdt = jnp.dtype(compute_dtype) if compute_dtype is not None else jnp.dtype(x.dtype)
    sub = 16 if cdt.itemsize < 4 else 8       # sublane multiple (bf16 / f32)
    it = cdt.itemsize
    ot = jnp.dtype(out_dtype).itemsize

    C_in_p = _round_up(C_in, sub)
    C_eff = C_in_p * s
    C_out_p = _round_up(C_out, sub)
    halo = 128 if J > 1 else 0

    # ---- generation-aware tiling / VMEM knobs ----
    vmem_cap = _tpu_vmem_capacity()
    if vmem_cap is None or vmem_cap <= (64 << 20):      # v7x (or unknown)
        tl_cap, shrink_at, vmem_clamp = 512, (16 << 20), (48 << 20)
        small_vmem = True
    else:                                                # v5e / v6e (128 MiB)
        tl_cap, shrink_at, vmem_clamp = 1024, (48 << 20), (96 << 20)
        small_vmem = False

    def _vmem_est(tl):
        return (2 * C_eff * (tl + halo) * it      # x cur + halo (double-buffered)
                + 2 * C_out_p * tl * ot           # output tile
                + 2 * C_out_p * J * C_eff * it    # flat weight
                + J * C_eff * tl * it             # in-kernel stacked operand
                + C_out_p * tl * 4)               # f32 accumulator

    TL = 128                                     # power-of-two multiple of 128
    while TL < tl_cap and TL < L_out:
        TL *= 2
    while TL > 128 and _vmem_est(TL) > shrink_at:
        TL //= 2
    n_lt = -(-L_out // TL)
    L_out_p = n_lt * TL
    hb = TL // 128

    # Optional C_out split so a tiny (N, n_lt) grid still feeds both v7x cores.
    if small_vmem and N * n_lt < 4 and C_out_p >= 2 * sub:
        C_out_p = _round_up(C_out_p, 2 * sub)
        n_co, TCO = 2, C_out_p // 2
    else:
        n_co, TCO = 1, C_out_p

    # ---- operands: one fused pad (cast first), one phase-stack pass ----
    L_phase = L_out_p + halo                     # post-phase padded length
    xc = x.astype(cdt) if cdt != x.dtype else x
    right = s * L_phase - L - padding            # >= padding by construction
    x_padded = jnp.pad(xc, ((0, 0), (0, C_in_p - C_in), (padding, right)))
    if s == 1:
        x_ph = x_padded                                      # (N, C_eff, L_phase)
    else:
        # channel index = c*s + p, value = x_padded[c, s*t' + p]
        x_ph = (x_padded.reshape(N, C_in_p, L_phase, s)
                .transpose(0, 1, 3, 2)
                .reshape(N, C_eff, L_phase))

    w = jnp.asarray(weight)
    w_pad = jnp.pad(w, ((0, C_out_p - C_out), (0, C_in_p - C_in), (0, J * s - K)))
    # w_flat[co, j*C_eff + c*s + p] = scale * W[co, c, j*s + p]
    w_flat = ((w_pad.reshape(C_out_p, C_in_p, J, s)
               .transpose(0, 2, 1, 3)
               .reshape(C_out_p, J * C_eff)) * scale).astype(cdt)

    in_specs = [pl.BlockSpec((None, C_eff, TL), lambda n, l, c: (n, 0, l))]
    args = [x_ph]
    if J > 1:
        in_specs.append(
            pl.BlockSpec((None, C_eff, 128), lambda n, l, c: (n, 0, (l + 1) * hb)))
        args.append(x_ph)
    in_specs.append(pl.BlockSpec((TCO, J * C_eff), lambda n, l, c: (c, 0)))
    args.append(w_flat)
    if use_bias:
        assert bias is not None, "use_bias=True requires a bias vector"
        b2 = jnp.pad(jnp.asarray(bias, jnp.float32),
                     (0, C_out_p - C_out)).reshape(C_out_p, 1)
        in_specs.append(pl.BlockSpec((TCO, 1), lambda n, l, c: (c, 0)))
        args.append(b2)

    vmem_limit = int(min(max(_vmem_est(TL) + (16 << 20), 32 << 20), vmem_clamp))

    cost = pl.CostEstimate(
        flops=2 * N * C_out * L_out * C_in * K,
        transcendentals=0,
        bytes_accessed=int(x_ph.size * it + w_flat.size * it
                           + N * C_out_p * L_out_p * ot
                           + (C_out_p * 4 if use_bias else 0)))

    kernel = functools.partial(_econv1d_kernel, K=J, use_bias=use_bias)
    out = pl.pallas_call(
        kernel,
        out_shape=jax.ShapeDtypeStruct((N, C_out_p, L_out_p), out_dtype),
        grid_spec=pltpu.PrefetchScalarGridSpec(
            num_scalar_prefetch=0,
            grid=(N, n_lt, n_co),
            in_specs=in_specs,
            out_specs=pl.BlockSpec((None, TCO, TL), lambda n, l, c: (n, c, l)),
        ),
        compiler_params=pltpu.CompilerParams(
            dimension_semantics=("parallel", "parallel", "parallel"),
            vmem_limit_bytes=vmem_limit,
        ),
        cost_estimate=cost,
    )(*args)
    return out[:, :C_out, :L_out]


if __name__ == "__main__":
    # Small shapes consistent with the module (NCL conv1d).
    N, C_in, C_out, L, K = 2, 4, 8, 16, 3

    key = jax.random.PRNGKey(0)
    kx, kw, kb = jax.random.split(key, 3)
    x = jax.random.normal(kx, (N, C_in, L), dtype=jnp.float32)
    weight = jax.random.normal(kw, (C_out, C_in, K), dtype=jnp.float32)
    bias = 0.1 * jax.random.normal(kb, (C_out,), dtype=jnp.float32)

    scale = math.sqrt(2.0) / math.sqrt(C_in * K)

    def ref_conv(xv, wv, bv, stride, padding):
        r = jax.lax.conv_general_dilated(
            xv, wv * scale, window_strides=(stride,),
            padding=[(padding, padding)],
            dimension_numbers=("NCH", "OIH", "NCH"))
        if bv is not None:
            r = r + bv[None, :, None]
        return r

    # stride-1 path (stacked single-matmul kernel), f32, with bias.
    out1 = jax.block_until_ready(
        equalized_conv1d(x, weight, bias, stride=1, padding=1, use_bias=True))
    ref1 = ref_conv(x, weight, bias, 1, 1)
    assert out1.shape == ref1.shape, (out1.shape, ref1.shape)
    assert jnp.allclose(out1, ref1, atol=1e-4, rtol=1e-4), "stride-1 mismatch"

    # stride-2 polyphase path (same kernel, no HBM im2col), bias disabled.
    out2 = jax.block_until_ready(
        equalized_conv1d(x, weight, None, stride=2, padding=1, use_bias=False))
    ref2 = ref_conv(x, weight, None, 2, 1)
    assert out2.shape == ref2.shape, (out2.shape, ref2.shape)
    assert jnp.allclose(out2, ref2, atol=1e-4, rtol=1e-4), "stride-2 mismatch"

    # bf16 compute path (recommended default on v6e/v7x); f32 accumulation,
    # so only input-rounding error vs the f32 reference -> loose tolerance.
    out3 = jax.block_until_ready(
        equalized_conv1d(x, weight, bias, stride=1, padding=1, use_bias=True,
                         compute_dtype=jnp.bfloat16))
    assert out3.shape == ref1.shape
    assert jnp.allclose(out3, ref1, atol=1e-1, rtol=1e-1), "bf16 mismatch"

    print("KERNEL_OK")
</pallas_src>

<mosaic_0001>
module attributes {stable_mosaic.version = 11 : i64} {
  func.func @_econv1d_kernel(%arg0: i32, %arg1: i32, %arg2: i32, %arg3: memref<1x8x128xf32, #tpu.memory_space<vmem>>, %arg4: memref<1x8x128xf32, #tpu.memory_space<vmem>>, %arg5: memref<8x24xf32, #tpu.memory_space<vmem>>, %arg6: memref<8x1xf32, #tpu.memory_space<vmem>>, %arg7: memref<1x8x128xf32, #tpu.memory_space<vmem>>) attributes {dimension_semantics = [#tpu.dimension_semantics<parallel>, #tpu.dimension_semantics<parallel>, #tpu.dimension_semantics<parallel>], iteration_bounds = array<i64: 2, 1, 1>, scalar_prefetch = 0 : i64, scratch_operands = 0 : i64, tpu.core_type = #tpu.core_type<tc>, window_params = [{transform_indices = @transform_0, window_bounds = array<i64: 1, 8, 128>}, {transform_indices = @transform_1, window_bounds = array<i64: 1, 8, 128>}, {transform_indices = @transform_2, window_bounds = array<i64: 8, 24>}, {transform_indices = @transform_3, window_bounds = array<i64: 8, 1>}, {transform_indices = @transform_4, window_bounds = array<i64: 1, 8, 128>}]} {
    %c0 = arith.constant 0 : index
    %c0_0 = arith.constant 0 : index
    %c0_1 = arith.constant 0 : index
    %0 = vector.load %arg3[%c0, %c0_0, %c0_1] : memref<1x8x128xf32, #tpu.memory_space<vmem>>, vector<1x8x128xf32>
    %1 = vector.shape_cast %0 : vector<1x8x128xf32> to vector<8x128xf32>
    %c0_2 = arith.constant 0 : index
    %c0_3 = arith.constant 0 : index
    %c0_4 = arith.constant 0 : index
    %2 = vector.load %arg4[%c0_2, %c0_3, %c0_4] : memref<1x8x128xf32, #tpu.memory_space<vmem>>, vector<1x8x128xf32>
    %3 = vector.shape_cast %2 : vector<1x8x128xf32> to vector<8x128xf32>
    %4 = vector.extract_strided_slice %1 {offsets = [0, 1], sizes = [8, 127], strides = [1, 1]} : vector<8x128xf32> to vector<8x127xf32>
    %5 = vector.extract_strided_slice %3 {offsets = [0, 0], sizes = [8, 1], strides = [1, 1]} : vector<8x128xf32> to vector<8x1xf32>
    %6 = tpu.concatenate %4, %5 in 1 : vector<8x127xf32>, vector<8x1xf32> -> vector<8x128xf32>
    %7 = vector.extract_strided_slice %1 {offsets = [0, 2], sizes = [8, 126], strides = [1, 1]} : vector<8x128xf32> to vector<8x126xf32>
    %8 = vector.extract_strided_slice %3 {offsets = [0, 0], sizes = [8, 2], strides = [1, 1]} : vector<8x128xf32> to vector<8x2xf32>
    %9 = tpu.concatenate %7, %8 in 1 : vector<8x126xf32>, vector<8x2xf32> -> vector<8x128xf32>
    %10 = tpu.concatenate %1, %6, %9 in 0 : vector<8x128xf32>, vector<8x128xf32>, vector<8x128xf32> -> vector<24x128xf32>
    %c0_5 = arith.constant 0 : index
    %c0_6 = arith.constant 0 : index
    %11 = vector.load %arg5[%c0_5, %c0_6] : memref<8x24xf32, #tpu.memory_space<vmem>>, vector<8x24xf32>
    %cst = arith.constant dense<0.000000e+00> : vector<8x128xf32>
    %12 = tpu.matmul %11, %10, %cst {dimension_numbers = #tpu.dot_dimension_numbers<[1], [0], [0], [1], [0, 0, 1, 1], [], []>} : vector<8x24xf32>, vector<24x128xf32>, vector<8x128xf32> -> vector<8x128xf32>
    %c0_7 = arith.constant 0 : index
    %c0_8 = arith.constant 0 : index
    %13 = vector.load %arg6[%c0_7, %c0_8] : memref<8x1xf32, #tpu.memory_space<vmem>>, vector<8x1xf32>
    %14 = vector.broadcast %13 : vector<8x1xf32> to vector<8x128xf32>
    %15 = arith.addf %12, %14 : vector<8x128xf32>
    %c0_9 = arith.constant 0 : index
    %c0_10 = arith.constant 0 : index
    %c0_11 = arith.constant 0 : index
    %16 = vector.load %arg7[%c0_9, %c0_10, %c0_11] : memref<1x8x128xf32, #tpu.memory_space<vmem>>, vector<1x8x128xf32>
    %17 = vector.shape_cast %16 : vector<1x8x128xf32> to vector<8x128xf32>
    %18 = vector.shape_cast %15 : vector<8x128xf32> to vector<1x8x128xf32>
    tpu.vector_store %arg7[%c0_9, %c0_10, %c0_11], %18 {strides = array<i32>} : memref<1x8x128xf32, #tpu.memory_space<vmem>>, vector<1x8x128xf32>,
    return
  }
  func.func @transform_0(%arg0: i32, %arg1: i32, %arg2: i32) -> (i32, i32, i32) {
    %c0_i32 = arith.constant 0 : i32
    %c0_i32_0 = arith.constant 0 : i32
    return %arg0, %c0_i32, %arg1 : i32, i32, i32
  }
  func.func @transform_1(%arg0: i32, %arg1: i32, %arg2: i32) -> (i32, i32, i32) {
    %c1_i32 = arith.constant 1 : i32
    %0 = arith.addi %arg1, %c1_i32 : i32
    %c1_i32_0 = arith.constant 1 : i32
    %1 = arith.muli %0, %c1_i32_0 : i32
    %c0_i32 = arith.constant 0 : i32
    %c0_i32_1 = arith.constant 0 : i32
    return %arg0, %c0_i32, %1 : i32, i32, i32
  }
  func.func @transform_2(%arg0: i32, %arg1: i32, %arg2: i32) -> (i32, i32) {
    %c0_i32 = arith.constant 0 : i32
    %c0_i32_0 = arith.constant 0 : i32
    return %arg2, %c0_i32 : i32, i32
  }
  func.func @transform_3(%arg0: i32, %arg1: i32, %arg2: i32) -> (i32, i32) {
    %c0_i32 = arith.constant 0 : i32
    %c0_i32_0 = arith.constant 0 : i32
    return %arg2, %c0_i32 : i32, i32
  }
  func.func @transform_4(%arg0: i32, %arg1: i32, %arg2: i32) -> (i32, i32, i32) {
    %c0_i32 = arith.constant 0 : i32
    return %arg0, %arg2, %arg1 : i32, i32, i32
  }
}

</mosaic_0001>

<bundles_post_ra>
// kernel: tpu_custom_call.1
= control target key start
LH: loop header
LB: loop body
LE: loop exit
PB: predicated region body
PF: predicated region fallthrough
CT: control target
= control target key end

     0   :  { %9 = vsyncpa [#allocation3], 0  ;;  %s1110_s0 = inlined_call_operand.hbm [shape: f32[2,8,256], index: 0, kind: input, shape index: {}]   ;;  %s1111_s1 = inlined_call_operand.hbm [shape: f32[2,8,256], index: 1, kind: input, shape index: {}]   ;;  %s1112_s2 = inlined_call_operand.vmem [shape: f32[8,24], index: 2, kind: input, shape index: {}]   ;;  %s1113_s3 = inlined_call_operand.vmem [shape: f32[8,1], index: 3, kind: input, shape index: {}]   ;;  %s1114_s4 = inlined_call_operand.hbm [shape: f32[2,8,128], index: 4, kind: output, shape index: {}]  }
   0x1   :  { %11 = vsyncpa [#allocation3 + $0x1], 0 }
   0x2   :  { %12 = vsyncpa [#allocation6], 0 }
   0x3   :  { %14 = vsyncpa [#allocation6 + $0x1], 0 }
   0x4   :  { %15 = vsyncpa [#allocation4], 0 }
   0x5   :  { %17 = vsyncpa [#allocation4 + $0x1], 0  ;;  %s880_s15 = smov 0   ;;  %s882_s16 = smov 0  }
   0x6   :  { %s884_s17 = smov 0   ;;  %s886_s18 = smov 0  }
   0x7   :  { %s888_s19 = smov 0   ;;  %s890_s20 = smov 0  }
   0x8 LB: > { %s578_s21 = sadd.s32 4294967295, %s844_s20   ;;  %s579_s22 = sadd.s32 4294967294, %s844_s20   ;;  %s844_s20 = sphi %s890_s20, %s23_s20   ;;  %s840_s19 = sphi %s888_s19, %s1134_s19   ;;  %s836_s18 = sphi %s886_s18, %s1133_s18   ;;  %s832_s17 = sphi %s884_s17, %s1132_s17   ;;  %s828_s16 = sphi %s882_s16, %s1131_s16   ;;  %s824_s15 = sphi %s880_s15, %s1130_s15  }
   0x9   : > { %s42_s23 = sadd.s32 1, %s840_s19  ;;  %s51_s24 = sadd.s32 1, %s832_s17 }
   0xa   : > { %p44_p0 = scmp.ge.s32.totalorder %s42_s23, 2  ;;  %p58_p1 = scmp.ne.s32.totalorder %s832_s17, %s828_s16 }
   0xb   : > { %p59_p2 = scmp.eq.s32.totalorder %s844_s20, 0  ;;  %p64_p3 = scmp.ne.s32.totalorder %s828_s16, %s824_s15 }
   0xc   : > { %s1136_s23 = smov (%p44_p0, %s42_s23), 0  ;;  %p65_p5 = scmp.eq.s32.totalorder %s578_s21, 0 }
   0xd   : > { %p921_p4 = por %p59_p2, %p58_p1  ;;  %s46_s26 = ssub.s32 %s840_s19, %s1136_s23 }
   0xe   : > { %p174_p6 = scmp.eq.s32.totalorder %s578_s21, 1  ;;  %p49_p7 = scmp.eq.s32.totalorder %s46_s26, 0 }
   0xf   : > { %p927_p8 = por %p65_p5, %p64_p3  ;;  %p180_p10 = scmp.eq.s32.totalorder %s579_s22, 1 }
  0x10   : > { %p931_p9 = por %p174_p6, %p58_p1  ;;  %p634_p13 = scmp.lt.s32.totalorder %s844_s20, 2 }
  0x11   : > { %s1118_s27 = scalar_select %p927_p8, 1, 0 }
  0x12   : > { %s1119_s28 = scalar_select %p931_p9, 1, 0 }
  0x13   : > { %s936_s29 = scalar_select %p49_p7, %s832_s17, %s51_s24  }
  0x14   : > { %p938_p11 = por %p180_p10, %p64_p3  ;;  %s945_s5 = sand.u32 1, %s832_s17  }
  0x15   : > { %s584_s6 = sshll.u32 %s945_s5, 3  ;;  %s599_s7 = sshll.u32 %s840_s19, 8 }
  0x16   : > { %s1120_s30 = scalar_select %p938_p11, 1, 0 }
  0x17   : > { %s954_s10 = scalar_lea.hbm %s1110_s0, %s599_s7  ;;  %s218_s11 = scalar_lea.vmem [#allocation2], %s584_s6 }
  0x18   : > { %s227_s12 = sshll.u32 %s218_s11, 4  ;;  %p962_p0 = pnand %p634_p13, %p921_p4  ;;  %s958_s12 = int_to_ptr.vmem [resolvable:$true] %s227_s12 }
  0x19   : > { %s215_s14 = scalar_lea.sflag [#allocation3], %s945_s5  ;;  %s697_s21 = scalar_lea.hbm %s954_s10, 128 }
  0x1a   : > { %p698_p3 = scmp.ne.s32.totalorder %s954_s10, %s697_s21  ;;  %p699_p5 = pneg %p962_p0 }
  0x1b   : > { %s702_s25 = scalar_lea.hbm %s1110_s0, 512  ;;  %p703_p4 = scmp.lt.u32.totalorder %s954_s10, %s1110_s0 }
  0x1c   : > { %p700_p6 = pnand %p699_p5, %p698_p3  ;;  %p704_p10 = scmp.lt.u32.totalorder %s702_s25, %s697_s21 }
  0x1d   : > { %p706_p12 = scmp.lt.u32.totalorder %s697_s21, %s954_s10 }
  0x1e   : > { %p701_p7 = pneg %p700_p6  ;;  %p705_p13 = por %p704_p10, %p703_p4 }
  0x20   : > { %p707_p1 = por %p706_p12, %p705_p13 }
  0x22   : > { %p708_p2 = pnand %p707_p1, %p701_p7 }
  0x24   : > { %711 = shalt.err (!%p708_p2)
}
  0x25   : > { %s712_s9 = scalar_lea.vmem %s958_s12, 128  ;;  %s846_s11 = smov [#allocation2]  }
  0x26   : > { %p713_p3 = scmp.ne.s32.totalorder %s958_s12, %s712_s9  ;;  %s717_s22 = sshll.u32 %s846_s11, 4  ;;  %s718_s22 = int_to_ptr.vmem [resolvable:$false] %s717_s22 }
  0x27   : > { %s719_s24 = scalar_lea.vmem %s718_s22, 256  ;;  %p720_p9 = scmp.lt.s32.totalorder %s958_s12, %s718_s22 }
  0x28   : > { %p715_p6 = pnand %p713_p3, %p699_p5  ;;  %p721_p4 = scmp.lt.s32.totalorder %s719_s24, %s712_s9 }
  0x2a   : > { %p716_p11 = pneg %p715_p6  ;;  %p722_p10 = por %p721_p4, %p720_p9 }
  0x2c   : > { %p723_p12 = pnand %p722_p10, %p716_p11 }
  0x2e   : > { %726 = shalt.err (!%p723_p12)
}
  0x2f   : > { %626 = dma.hbm_to_vmem [thread:$0]  (!%p962_p0), %s954_s10, 128, %s958_s12, %s215_s14  }
  0x30   : > { %p1122_p1 = scmp.lt.s32.totalorder %s844_s20, 3  ;;  %p1123_p2 = scmp.ge.s32.totalorder %s844_s20, 1 }
  0x31   : > { %s481_s8 = scalar_lea.hbm %s1111_s1, %s599_s7  ;;  %s238_s9 = scalar_lea.vmem [#allocation5], %s584_s6 }
  0x32   : > { %p998_p7 = pnand %p1123_p2, %p1122_p1  ;;  %s248_s11 = sshll.u32 %s238_s9, 4  ;;  %s249_s11 = int_to_ptr.vmem [resolvable:$true] %s248_s11 }
  0x33   : > { %s1009_s22 = scalar_lea.hbm %s481_s8, 128  ;;  %s235_s10 = scalar_lea.sflag [#allocation6], %s945_s5 }
  0x34   : > { %s1124_s21 = scalar_select %p998_p7, 1, 0 }
  0x35   : > { %s757_s12 = scalar_lea.hbm %s481_s8, 256  ;;  %s732_s7 = scalar_lea.hbm %s1111_s1, 512 }
  0x36   : > { %p728_p9 = scmp.ne.s32.totalorder %s1009_s22, %s757_s12  ;;  %p733_p3 = scmp.lt.u32.totalorder %s1009_s22, %s1111_s1 }
  0x37   : > { %p734_p6 = scmp.lt.u32.totalorder %s732_s7, %s757_s12  ;;  %p736_p10 = scmp.lt.u32.totalorder %s757_s12, %s1009_s22 }
  0x38   : > { %p730_p11 = pnand %p728_p9, %p699_p5 }
  0x39   : > { %p735_p4 = por %p734_p6, %p733_p3 }
  0x3a   : > { %p731_p13 = pneg %p730_p11 }
  0x3b   : > { %p737_p12 = por %p736_p10, %p735_p4 }
  0x3d   : > { %p738_p1 = pnand %p737_p12, %p731_p13 }
  0x3f   : > { %741 = shalt.err (!%p738_p1)
}
  0x40   : > { %s742_s5 = scalar_lea.vmem %s249_s11, 128  ;;  %s847_s26 = smov [#allocation5]  }
  0x41   : > { %p743_p2 = scmp.ne.s32.totalorder %s249_s11, %s742_s5  ;;  %s747_s8 = sshll.u32 %s847_s26, 4  ;;  %s748_s8 = int_to_ptr.vmem [resolvable:$false] %s747_s8 }
  0x42   : > { %s749_s9 = scalar_lea.vmem %s748_s8, 256  ;;  %p750_p8 = scmp.lt.s32.totalorder %s249_s11, %s748_s8 }
  0x43   : > { %p745_p9 = pnand %p743_p2, %p699_p5  ;;  %p751_p7 = scmp.lt.s32.totalorder %s749_s9, %s742_s5 }
  0x45   : > { %p746_p11 = pneg %p745_p9  ;;  %p752_p3 = por %p751_p7, %p750_p8 }
  0x47   : > { %p753_p6 = pnand %p752_p3, %p746_p11 }
  0x49   : > { %756 = shalt.err (!%p753_p6)
}
  0x4a   : > { %629 = dma.hbm_to_vmem [thread:$0]  (!%p962_p0), %s1009_s22, 128, %s249_s11, %s235_s10  }
  0x4b   : > { %p1125_p13 = scmp.ne.s32.totalorder %s1124_s21, 0 }
  0x4c   : > { %s1033_s12 = sand.u32 (!%p1125_p13), 1, %s828_s16   ;;  %p1126_p8 = scmp.ne.s32.totalorder (!%p1125_p13), %s1118_s27, 0 }
  0x4d   : > { %257 = sbr.rel (%p1125_p13) target bundleno = 443 (0x1bb), region = 36  ;;  %s1036_s14 = sshll.u32 (!%p1125_p13), %s1033_s12, 3 }
  0x4e   : > { %s260_s24 = scalar_lea.sflag (!%p1125_p13), [#allocation3], %s1033_s12  ;;  %s263_s7 = scalar_lea.vmem (!%p1125_p13), [#allocation2], %s1036_s14 }
  0x54   : > { %811 = dma.done.wait (%p1126_p8), %s260_s24, 128  }
  0x55   : > { %813 = vsyncadd (%p1126_p8), %s260_s24, 4294967168  ;;  %s269_s13 = scalar_lea.sflag [#allocation6], %s1033_s12  ;;  %s272_s21 = scalar_lea.vmem [#allocation5], %s1036_s14 }
  0x56   : > { %815 = dma.done.wait (%p1126_p8), %s269_s13, 128  }
  0x57   : > { %817 = vsyncadd (%p1126_p8), %s269_s13, 4294967168  ;;  %v848_v0 = vmov 0.0|0.0   ;;  %vm849_vm0 = vmmov 0   ;;  %v850_v1 = vmov 0.0   ;;  %v319_v2 = vld [vmem:[%s263_s7] sm:$0xff]  ;;  %v320_v3 = vld [vmem:[%s272_s21] sm:$0xff] }
  0x58   : > { %614 = vmatprep.subr.bf16.mxu0 %v848_v0  ;;  %611 = vmatprep.mubr.msk.f32.mxu0 %vm849_vm0, %v850_v1  ;;  %v690_v4 = vpack.i.bf16 %v320_v3, %v319_v2  ;;  %s851_s11 = smov 126   ;;  %v852_v5 = vmov 0   ;;  %v340_v6 = vld [vmem:[%s1113_s3] sm:$0xff]  ;;  %s853_s25 = smov 127   ;;  %vm329_vm1 = vcmask 1039360   ;;  %vm337_vm2 = vcmask 1031168  }
  0x59   : > { %334 = vrot.lane.b32.xlu1 %v320_v3, %s851_s11  ;;  %696 = vset.pattern.permute.xlu0 %v852_v5  ;;  %v339_v15 = vld [vmem:[%s1112_s2] sm:$0xff]  ;;  %vm346_vm3 = vcmask 195584   ;;  %s596_s5 = sshll.u32 %s836_s18, 7  ;;  %s309_s26 = scalar_lea.vmem [#allocation7], %s1036_s14 }
  0x5a   : > { %695 = vset.pattern.permute.xlu1 %v852_v5  ;;  %691 = vrot.lane.b32.xlu0 %v690_v4, %s853_s25  ;;  %s437_s8 = sshll.u32 %s309_s26, 4  ;;  %s1061_s7 = scalar_lea.hbm %s1114_s4, %s596_s5  ;;  %s1063_s8 = int_to_ptr.vmem [resolvable:$true] %s437_s8 }
  0x5b   : > { %s422_s13 = scalar_lea.sflag [#allocation4], %s1033_s12  ;;  %s758_s21 = scalar_lea.vmem %s1063_s8, 128 }
  0x5c   : > { %p759_p0 = scmp.ne.s32.totalorder %s1063_s8, %s758_s21  ;;  %p1127_p5 = scmp.ne.s32.totalorder %s1119_s28, 0 }
  0x5d   : > { %343 = vperm.xlu1 %695, %v340_v6   ;;  %s854_s18 = smov [#allocation7]  }
  0x5e   : > { %331 = vrot.lane.b32.xlu0 %v319_v2, %s851_s11  ;;  %p760_p7 = pnand %p759_p0, %p1127_p5  ;;  %s762_s14 = sshll.u32 %s854_s18, 4  ;;  %s763_s14 = int_to_ptr.vmem [resolvable:$false] %s762_s14 }
  0x5f   : > { %s764_s11 = scalar_lea.vmem %s763_s14, 256  ;;  %p765_p10 = scmp.lt.s32.totalorder %s1063_s8, %s763_s14 }
  0x60   : > { %p761_p4 = pneg %p760_p7  ;;  %p766_p12 = scmp.lt.s32.totalorder %s764_s11, %s758_s21 }
  0x62   : > { %p767_p1 = por %p766_p12, %p765_p10 }
  0x64   : > { %p768_p2 = pnand %p767_p1, %p761_p4 }
  0xcb   : > { %v335_v12 = vpop.permute.xlu1 %334 }
  0xcc   : > { %v692_v7 = vpop.permute.xlu0 %691 }
  0xcd   : > { %v694_v8 = vunpack.i.h.bf16 %v692_v7  ;;  %v693_v9 = vunpack.i.l.bf16 %v692_v7 }
  0xcf   : > { %v330_v10 = vsel %vm329_vm1, %v693_v9, %v694_v8 }
  0xd0   : > { %v615_v11 = vpack.c.bf16 %v330_v10, %v319_v2  ;;  %v332_v13 = vpop.permute.xlu0 %331 }
  0xd1   : > { %v338_v14 = vsel %vm337_vm2, %v332_v13, %v335_v12 }
  0xd2   : > { %616 = vmatpush3.bf16.msra.mxu0 %v615_v11 }
  0xd3   : > { %609 = vmatprep.subr.mxu0 %v850_v1 }
  0xd6   : > { %610 = vmatpush3.msra.mxu0 %v338_v14 }
  0xd7   : > { %612 = vmatmul.mubr.msk.f32.vlgmr.msra.gmra.mrb[0].mxu0 %vm346_vm3, %v339_v15 }
  0xdc   : > { %v344_v16 = vpop.permute.xlu1 %343 }
 0x1aa   : > { %v416_v17 = vpop.f32.mrb[0].mxu0 }
 0x1ab   : > { %v417_v18 = vadd.f32 %v416_v17, %v344_v16  ;;  %v613_v19 = vpop.f32.mrb[1].mxu0 }
 0x1ad   : > { %420 = vst [vmem:[%s309_s26] sm:$0xff] %v417_v18 }
 0x1ae   : > { %771 = shalt.err (!%p768_p2)
}
 0x1af   : > { %s772_s12 = scalar_lea.hbm %s1061_s7, 128  ;;  %s776_s25 = scalar_lea.hbm %s1114_s4, 256 }
 0x1b0   : > { %p773_p9 = scmp.ne.s32.totalorder %s1061_s7, %s772_s12  ;;  %p777_p6 = scmp.lt.u32.totalorder %s1061_s7, %s1114_s4 }
 0x1b1   : > { %p778_p13 = scmp.lt.u32.totalorder %s776_s25, %s772_s12  ;;  %p780_p0 = scmp.lt.u32.totalorder %s772_s12, %s1061_s7 }
 0x1b2   : > { %p774_p11 = pnand %p773_p9, %p1127_p5 }
 0x1b3   : > { %p779_p8 = por %p778_p13, %p777_p6 }
 0x1b4   : > { %p775_p3 = pneg %p774_p11 }
 0x1b5   : > { %p781_p7 = por %p780_p0, %p779_p8 }
 0x1b7   : > { %p782_p4 = pnand %p781_p7, %p775_p3 }
 0x1b9   : > { %785 = shalt.err (!%p782_p4)
}
 0x1ba   : > { %621 = dma.vmem_to_hbm [thread:$0]  (%p1127_p5), %s1063_s8, 128, %s1061_s7, %s422_s13  }
 0x1bb PF: > { %s449_s5 = sand.u32 1, %s824_s15   ;;  %p1128_p10 = scmp.ne.s32.totalorder %s1120_s30, 0 }
 0x1bc   : > { %p1129_p12 = scmp.ge.s32.totalorder %s844_s20, 2  ;;  %s450_s26 = scalar_lea.sflag [#allocation4], %s449_s5 }
 0x1be   : > { %p631_p1 = pnand %p1129_p12, %p1128_p10 }
 0x1c0   : > { %819 = dma.done.wait (!%p631_p1), %s450_s26, 128  }
 0x1c1   : > { %821 = vsyncadd (!%p631_p1), %s450_s26, 4294967168  ;;  %s23_s20 = sadd.s32 1, %s844_s20   ;;  %s1130_s15 = smov %s828_s16 }
 0x1c2   : > { %p20_p2 = scmp.ge.s32.totalorder %s23_s20, 4   ;;  %s1131_s16 = smov %s832_s17 }
 0x1c3   : > { %s1132_s17 = smov %s936_s29  ;;  %s1133_s18 = smov %s840_s19 }
 0x1c4   : > { %s1134_s19 = smov %s1136_s23  ;;  %22 = sbr.rel (!%p20_p2) target bundleno = 8 (0x8), region = 100 }
 0x1cb   :  { %455 = vsyncpa [#allocation3], 1 }
 0x1cc   :  { %457 = vsyncpa [#allocation3 + $0x1], 1 }
 0x1cd   :  { %458 = vsyncpa [#allocation6], 1 }
 0x1ce   :  { %460 = vsyncpa [#allocation6 + $0x1], 1 }
 0x1cf   :  { %461 = vsyncpa [#allocation4], 1 }
 0x1d0   :  { %463 = vsyncpa [#allocation4 + $0x1], 1 }

</bundles_post_ra>
